<compile_context>
chip_gen: v5e
topology: v5e:2x2
jax: 0.10.0
libtpu: 0.0.40
codegen_flags: <defaults>
</compile_context>

<pallas_src>
import functools
import math

import jax
import jax.numpy as jnp
from jax.experimental import pallas as pl
from jax.experimental.pallas import tpu as pltpu

BN_EPS = 1e-5
EXPANSION = 4  # Bottleneck.expansion

# Tiling configuration (review: tm cap 512 rounded to 16 for bf16, tn/tk cap 1024,
# explicit scoped-VMEM limit so the bigger tiles also compile on v5e).
TM_ALIGN, TM_CAP = 16, 512
TNK_ALIGN, TNK_CAP = 128, 1024
VMEM_LIMIT = 32 * 1024 * 1024


def _round_up(x, m):
    return ((x + m - 1) // m) * m


def _tile_and_pad(d, align, cap):
    t = min(cap, _round_up(d, align))
    return t, _round_up(d, t)


def _padded_n(n):
    return _tile_and_pad(n, TNK_ALIGN, TNK_CAP)[1]


# ----------------------------------------------------------------------------
# Activation helper (used both in-kernel and for the plain-jnp head)
# ----------------------------------------------------------------------------
def _apply_act(y, act):
    if act == "relu":
        return jnp.maximum(y, 0.0)
    if act == "leaky":
        return jnp.where(y > 0, y, 0.01 * y)                 # F.leaky_relu
    if act == "elu":
        # min() keeps exp() finite on the unselected (positive) branch.
        return jnp.where(y > 0, y, jnp.exp(jnp.minimum(y, 0.0)) - 1.0)
    return y


# ----------------------------------------------------------------------------
# Pallas kernels
# ----------------------------------------------------------------------------
def _mm_kernel(a_ref, b_ref, s_ref, c_ref, o_ref, acc_ref, *, act):
    # Dense tiled matmul + folded-BN scale/bias + activation.
    k = pl.program_id(2)

    @pl.when(k == 0)
    def _init():
        acc_ref[...] = jnp.zeros_like(acc_ref)

    acc_ref[...] += jnp.dot(a_ref[...], b_ref[...],
                            preferred_element_type=jnp.float32)

    @pl.when(k == pl.num_programs(2) - 1)
    def _epilogue():
        y = acc_ref[...] * s_ref[...] + c_ref[...]
        o_ref[...] = _apply_act(y, act).astype(o_ref.dtype)


def _mm_res_kernel(a_ref, b_ref, s_ref, c_ref, r_ref, o_ref, acc_ref, *, act):
    # Same as _mm_kernel but fuses the residual add into the epilogue.
    k = pl.program_id(2)

    @pl.when(k == 0)
    def _init():
        acc_ref[...] = jnp.zeros_like(acc_ref)

    acc_ref[...] += jnp.dot(a_ref[...], b_ref[...],
                            preferred_element_type=jnp.float32)

    @pl.when(k == pl.num_programs(2) - 1)
    def _epilogue():
        y = acc_ref[...] * s_ref[...] + c_ref[...] + r_ref[...].astype(jnp.float32)
        o_ref[...] = _apply_act(y, act).astype(o_ref.dtype)


def _gconv_s1_kernel(x_ref, w_ref, s_ref, c_ref, o_ref, acc_ref, *, th, ow, act):
    # Fused-im2col grouped 3x3 stride-1 conv for one 128-output-channel chunk:
    # 9 shifted reads of the zero-padded NHWC block, 9 MXU matmuls, f32 acc.
    #   x_ref: (1, th+2, w+2, 128)  -- the chunk's 128 input channels (+halo rows)
    #   w_ref: (1, 9, 128, 128)     -- resident per-chunk, block-diagonal per tap
    #   o_ref: (1, th, ow, 128)
    acc_ref[...] = jnp.zeros_like(acc_ref)
    for ki in range(3):
        for kj in range(3):
            a = x_ref[0, ki:ki + th, kj:kj + ow, :].reshape(th * ow, 128)
            acc_ref[...] += jnp.dot(a, w_ref[0, 3 * ki + kj],
                                    preferred_element_type=jnp.float32)
    y = acc_ref[...] * s_ref[...] + c_ref[...]
    o_ref[0] = _apply_act(y, act).reshape(th, ow, 128).astype(o_ref.dtype)


def _gmm_s2_kernel(a_ref, w_ref, s_ref, c_ref, o_ref, acc_ref, *, act):
    # Stride-2 grouped conv: tap index on the reduction grid axis, per-chunk
    # (128,128) block-diagonal tap weights.
    k = pl.program_id(2)

    @pl.when(k == 0)
    def _init():
        acc_ref[...] = jnp.zeros_like(acc_ref)

    acc_ref[...] += jnp.dot(a_ref[...], w_ref[0, 0],
                            preferred_element_type=jnp.float32)

    @pl.when(k == pl.num_programs(2) - 1)
    def _epilogue():
        y = acc_ref[...] * s_ref[...] + c_ref[...]
        o_ref[...] = _apply_act(y, act).astype(o_ref.dtype)


def _maxpool_kernel(q_ref, o_ref, *, tr, ow):
    # q_ref: (1, 4, tr+1, ow+1, c) quadrant views (even/odd rows x even/odd cols)
    # of the -inf padded input; out[i,j] = max over padded rows {2i,2i+1,2i+2}
    # and cols {2j,2j+1,2j+2}.
    # TODO(synk): c=64 half-fills the 128 lanes; folding (w, c) into the lane dim
    # for full-lane VPU/vst throughput is not implemented.
    def win(k, di, dj):
        return q_ref[0, k, di:di + tr, dj:dj + ow, :]

    m = win(0, 0, 0)
    for k, offsets in ((0, ((0, 1), (1, 0), (1, 1))),
                       (1, ((0, 0), (1, 0))),
                       (2, ((0, 0), (0, 1))),
                       (3, ((0, 0),))):
        for di, dj in offsets:
            m = jnp.maximum(m, win(k, di, dj))
    o_ref[0] = m


# ----------------------------------------------------------------------------
# Pallas call wrappers
# ----------------------------------------------------------------------------
def matmul_bn_act(A, B, scale, bias, *, act, residual=None, n_out=None):
    """y = act((A @ B) * scale + bias [+ residual]); B/scale/bias are pre-padded."""
    M, K = A.shape
    Kp, Np = B.shape
    A = A.astype(jnp.bfloat16)

    tm, Mp = _tile_and_pad(M, TM_ALIGN, TM_CAP)
    tn = min(TNK_CAP, Np)
    tk = min(TNK_CAP, Kp)
    if M != Mp or K != Kp:
        A = jnp.pad(A, ((0, Mp - M), (0, Kp - K)))

    in_specs = [
        pl.BlockSpec((tm, tk), lambda i, j, k: (i, k)),
        pl.BlockSpec((tk, tn), lambda i, j, k: (k, j)),
        pl.BlockSpec((1, tn), lambda i, j, k: (0, j)),
        pl.BlockSpec((1, tn), lambda i, j, k: (0, j)),
    ]
    args = [A, B, scale, bias]
    res_bytes = 0
    if residual is not None:
        r = residual.astype(jnp.bfloat16)
        if r.shape != (Mp, Np):
            r = jnp.pad(r, ((0, Mp - r.shape[0]), (0, Np - r.shape[1])))
        in_specs.append(pl.BlockSpec((tm, tn), lambda i, j, k: (i, j)))
        args.append(r)
        kernel = functools.partial(_mm_res_kernel, act=act)
        res_bytes = Mp * Np * 2
    else:
        kernel = functools.partial(_mm_kernel, act=act)

    out = pl.pallas_call(
        kernel,
        out_shape=jax.ShapeDtypeStruct((Mp, Np), jnp.bfloat16),
        grid=(Mp // tm, Np // tn, Kp // tk),
        in_specs=in_specs,
        out_specs=pl.BlockSpec((tm, tn), lambda i, j, k: (i, j)),
        scratch_shapes=[pltpu.VMEM((tm, tn), jnp.float32)],
        compiler_params=pltpu.CompilerParams(
            # Late/small layers may collapse the parallel axes to 1 block (v7x
            # then runs them on a single TensorCore) -- accepted for this model.
            dimension_semantics=("parallel", "parallel", "arbitrary"),
            vmem_limit_bytes=VMEM_LIMIT),
        cost_estimate=pl.CostEstimate(
            flops=2 * Mp * Np * Kp,
            transcendentals=0,
            bytes_accessed=(Mp * Kp + Kp * Np + Mp * Np) * 2 + Np * 8 + res_bytes),
    )(*args)
    out = out[:M]
    if n_out is not None and n_out != Np:
        out = out[:, :n_out]
    return out


@functools.partial(jax.jit, static_argnames=("stride", "act"))
def conv1x1_bn_act(x, w_kn, scale, bias, residual=None, *, stride, act):
    """1x1 conv (NHWC) + folded BN + activation (+ optional fused residual add)."""
    if stride > 1:
        x = x[:, ::stride, ::stride, :]
    n, h, w, cin = x.shape
    A = x.reshape(n * h * w, cin)
    r = None if residual is None else residual.reshape(n * h * w, -1)
    y = matmul_bn_act(A, w_kn, scale, bias, act=act, residual=r)
    return y.reshape(n, h, w, -1)


@functools.partial(jax.jit,
                   static_argnames=("kh", "kw", "stride", "pad", "act", "cout"))
def conv_kxk_bn_act(x, w_kn, scale, bias, *, kh, kw, stride, pad, act, cout):
    """Dense kxk conv via channel-major im2col + tiled matmul (stem only)."""
    n, h, w, cin = x.shape
    oh = (h + 2 * pad - kh) // stride + 1
    ow = (w + 2 * pad - kw) // stride + 1
    xp = jnp.pad(x, ((0, 0), (pad, pad), (pad, pad), (0, 0)))
    # TODO(synk): the 7x7 stem (one layer, cin = num_image_layers) still
    # materializes its 49 tap views via XLA; the fused in-kernel tap path is
    # reserved for the 33 grouped 3x3 convs where the traffic actually matters.
    taps = [xp[:, i:i + (oh - 1) * stride + 1:stride,
               j:j + (ow - 1) * stride + 1:stride, :]
            for i in range(kh) for j in range(kw)]
    A = jnp.stack(taps, axis=-1).reshape(n * oh * ow, cin * kh * kw)
    y = matmul_bn_act(A, w_kn, scale, bias, act=act, n_out=cout)
    return y.reshape(n, oh, ow, cout)


@functools.partial(jax.jit, static_argnames=("act",))
def conv3x3_grouped_s1(x, wc, scale, bias, *, act):
    """Stride-1 grouped 3x3 conv with the im2col gather fused into the kernel."""
    n, h, w, width = x.shape
    n_chunks = width // 128
    oh, ow = h, w
    if oh <= 64:                      # whole-image row band (no halo duplication)
        th, n_hb = oh, 1
    else:                             # row-tile with a 2-row halo per band
        th = 32
        n_hb = -(-oh // th)
    oh_p = n_hb * th
    w_in = w + 2
    xp = jnp.pad(x, ((0, 0), (1, oh_p - oh + 1), (1, 1), (0, 0)))
    if n_hb == 1:
        xb = xp                                            # (n, th+2, w+2, width)
    else:
        xb = jnp.stack([xp[:, i * th:i * th + th + 2] for i in range(n_hb)],
                       axis=1).reshape(n * n_hb, th + 2, w_in, width)

    out = pl.pallas_call(
        functools.partial(_gconv_s1_kernel, th=th, ow=ow, act=act),
        out_shape=jax.ShapeDtypeStruct((n * n_hb, th, ow, width), jnp.bfloat16),
        # Chunk axis outermost: each 288 KB weight chunk is fetched once and stays
        # resident while the matching 128 input channels stream (1x activation read).
        grid=(n_chunks, n * n_hb),
        in_specs=[
            pl.BlockSpec((1, th + 2, w_in, 128), lambda g, bh: (bh, 0, 0, g)),
            pl.BlockSpec((1, 9, 128, 128), lambda g, bh: (g, 0, 0, 0)),
            pl.BlockSpec((1, 128), lambda g, bh: (0, g)),
            pl.BlockSpec((1, 128), lambda g, bh: (0, g)),
        ],
        out_specs=pl.BlockSpec((1, th, ow, 128), lambda g, bh: (bh, 0, 0, g)),
        scratch_shapes=[pltpu.VMEM((th * ow, 128), jnp.float32)],
        compiler_params=pltpu.CompilerParams(
            dimension_semantics=("parallel", "parallel"),
            vmem_limit_bytes=VMEM_LIMIT),
        cost_estimate=pl.CostEstimate(
            flops=2 * (n * n_hb) * th * ow * width * 9 * 128,
            transcendentals=0,
            bytes_accessed=xb.size * 2 + wc.size * 2
                           + (n * n_hb) * th * ow * width * 2 + width * 8),
    )(xb, wc, scale, bias)
    out = out.reshape(n, oh_p, ow, width)
    return out[:, :oh] if oh_p != oh else out


@functools.partial(jax.jit, static_argnames=("act",))
def conv3x3_grouped_s2(x, wc, scale, bias, *, act):
    """Stride-2 grouped 3x3 conv (only 3 of 33 blocks)."""
    n, h, w, width = x.shape
    n_chunks = width // 128
    oh = (h - 1) // 2 + 1
    ow = (w - 1) // 2 + 1
    M = n * oh * ow
    xp = jnp.pad(x, ((0, 0), (1, 1), (1, 1), (0, 0)))
    # TODO(synk): the 3 stride-2 grouped convs still materialize 9 tap views via
    # XLA (tap-major) before the chunked matmul; a fused strided-read path like
    # the stride-1 kernel is not implemented.
    taps = [xp[:, ki:ki + 2 * (oh - 1) + 1:2, kj:kj + 2 * (ow - 1) + 1:2, :]
            for ki in range(3) for kj in range(3)]
    A = jnp.concatenate([t.reshape(M, width) for t in taps], axis=-1)
    tm, Mp = _tile_and_pad(M, TM_ALIGN, TM_CAP)
    A = jnp.pad(A.astype(jnp.bfloat16), ((0, Mp - M), (0, 0)))

    out = pl.pallas_call(
        functools.partial(_gmm_s2_kernel, act=act),
        out_shape=jax.ShapeDtypeStruct((Mp, width), jnp.bfloat16),
        grid=(n_chunks, Mp // tm, 9),
        in_specs=[
            pl.BlockSpec((tm, 128), lambda g, i, k: (i, k * n_chunks + g)),
            pl.BlockSpec((1, 1, 128, 128), lambda g, i, k: (g, k, 0, 0)),
            pl.BlockSpec((1, 128), lambda g, i, k: (0, g)),
            pl.BlockSpec((1, 128), lambda g, i, k: (0, g)),
        ],
        out_specs=pl.BlockSpec((tm, 128), lambda g, i, k: (i, g)),
        scratch_shapes=[pltpu.VMEM((tm, 128), jnp.float32)],
        compiler_params=pltpu.CompilerParams(
            dimension_semantics=("parallel", "parallel", "arbitrary"),
            vmem_limit_bytes=VMEM_LIMIT),
        cost_estimate=pl.CostEstimate(
            flops=2 * Mp * width * 9 * 128,
            transcendentals=0,
            bytes_accessed=A.size * 2 + wc.size * 2 + Mp * width * 2 + width * 8),
    )(A, wc, scale, bias)
    return out[:M].reshape(n, oh, ow, width)


@jax.jit
def maxpool_3x3_s2_p1(x):
    """3x3 / stride-2 / pad-1 max pool (NHWC), row-tiled, 9-window max in-kernel."""
    n, h, w, c = x.shape
    oh = (h - 1) // 2 + 1
    ow = (w - 1) // 2 + 1
    if oh <= 32:
        tr, n_rb = oh, 1
    else:
        tr = 16
        n_rb = -(-oh // tr)
    oh_p = n_rb * tr
    hp = 2 * oh_p + 2
    wp = 2 * ow + 2
    xp = jnp.pad(x, ((0, 0), (1, hp - h - 1), (1, wp - w - 1), (0, 0)),
                 constant_values=-jnp.inf)
    quads = jnp.stack([xp[:, 0::2, 0::2], xp[:, 0::2, 1::2],
                       xp[:, 1::2, 0::2], xp[:, 1::2, 1::2]],
                      axis=1)                       # (n, 4, oh_p+1, ow+1, c)
    if n_rb == 1:
        qb = quads
    else:
        qb = jnp.stack([quads[:, :, i * tr:i * tr + tr + 1] for i in range(n_rb)],
                       axis=1).reshape(n * n_rb, 4, tr + 1, ow + 1, c)

    out = pl.pallas_call(
        functools.partial(_maxpool_kernel, tr=tr, ow=ow),
        out_shape=jax.ShapeDtypeStruct((n * n_rb, tr, ow, c), x.dtype),
        grid=(n * n_rb,),
        in_specs=[pl.BlockSpec((1, 4, tr + 1, ow + 1, c),
                               lambda i: (i, 0, 0, 0, 0))],
        out_specs=pl.BlockSpec((1, tr, ow, c), lambda i: (i, 0, 0, 0)),
        compiler_params=pltpu.CompilerParams(
            dimension_semantics=("parallel",),
            vmem_limit_bytes=VMEM_LIMIT),
    )(qb)
    out = out.reshape(n, oh_p, ow, c)
    return out[:, :oh] if oh_p != oh else out


# ----------------------------------------------------------------------------
# Tiny layers kept as plain jnp (review: Pallas launch overhead dominates here)
# ----------------------------------------------------------------------------
@jax.jit
def _global_pool_fc(x, w, b):
    # AdaptiveAvgPool2d((1,1)) + flatten + cnn.fc, M = batch rows.
    return jnp.mean(x.astype(jnp.float32), axis=(1, 2)) @ w + b


@functools.partial(jax.jit, static_argnames=("act",))
def _head_forward(x1, data, hp, *, act):
    x2 = _apply_act(data.astype(jnp.float32) @ hp["source1_w"] + hp["source1_b"], act)
    x2 = x2 @ hp["source2_w"] + hp["source2_b"]
    xh = jnp.concatenate([x1, x2], axis=1)
    xh = _apply_act(xh @ hp["fc1_w"] + hp["fc1_b"], act)
    return xh @ hp["fc2_w"] + hp["fc2_b"]


# ----------------------------------------------------------------------------
# Deterministic parameter construction (weights pre-padded to matmul layouts)
# ----------------------------------------------------------------------------
class _ParamInit:
    def __init__(self, seed):
        self._base = jax.random.PRNGKey(seed)
        self._n = 0

    def normal(self, shape, std):
        self._n += 1
        k = jax.random.fold_in(self._base, self._n)
        return std * jax.random.normal(k, shape, jnp.float32)


def _bn_fold(num_features, pad_to):
    # TODO(synk): BatchNorm2d uses eval-mode identity running statistics
    # (gamma=1, beta=0, mean=0, var=1) folded into scale/bias; trained running
    # stats / train-mode batch statistics are not implemented.
    gamma = jnp.ones((num_features,), jnp.float32)
    beta = jnp.zeros((num_features,), jnp.float32)
    running_mean = jnp.zeros((num_features,), jnp.float32)
    running_var = jnp.ones((num_features,), jnp.float32)
    scale = gamma / jnp.sqrt(running_var + BN_EPS)
    bias = beta - running_mean * scale
    # Padded columns carry scale=bias=0 so they stay exactly zero through the
    # relu/leaky/elu epilogue and are sliced away.
    scale = jnp.pad(scale, (0, pad_to - num_features)).reshape(1, pad_to)
    bias = jnp.pad(bias, (0, pad_to - num_features)).reshape(1, pad_to)
    return scale, bias


def _conv_matB(init, out_c, cin, kh, kw):
    # Dense conv weight as (cin*kh*kw, out_c), channel-major tap-minor, pre-padded
    # to its (Kp, Np) matmul tile shape at construction time (no per-call pads).
    K = cin * kh * kw
    w = init.normal((out_c, cin, kh, kw), 1.0 / math.sqrt(K))
    B = jnp.transpose(w, (1, 2, 3, 0)).reshape(K, out_c)
    Kp = _tile_and_pad(K, TNK_ALIGN, TNK_CAP)[1]
    Np = _padded_n(out_c)
    return jnp.pad(B, ((0, Kp - K), (0, Np - out_c))).astype(jnp.bfloat16)


def _grouped_conv_wc(init, width, groups):
    # Grouped 3x3 weight stored per 128-output-channel chunk, tap-major:
    # wc[g, t] is a (128, 128) block-diagonal matrix (gb = 128/ng groups per chunk).
    ng = width // groups          # in == out channels per group
    gb = 128 // ng
    n_chunks = width // 128
    w = init.normal((width, ng, 3, 3), 1.0 / math.sqrt(ng * 9))
    w6 = w.reshape(n_chunks, gb, ng, ng, 3, 3)            # [g, gg, o, ci, ki, kj]
    wt = jnp.transpose(w6, (0, 4, 5, 1, 3, 2)).reshape(n_chunks, 9, gb, ng, ng)
    wc = jnp.zeros((n_chunks, 9, 128, 128), jnp.float32)
    for gg in range(gb):
        wc = wc.at[:, :, gg * ng:(gg + 1) * ng, gg * ng:(gg + 1) * ng].set(wt[:, :, gg])
    return wc.astype(jnp.bfloat16)


def _make_bottleneck(init, inplanes, planes, stride, groups, base_width):
    width = int(planes * (base_width / 64.0)) * groups
    out_c = planes * EXPANSION
    p = {}
    a = {"stride": stride, "has_ds": stride != 1 or inplanes != out_c}
    p["w1"] = _conv_matB(init, width, inplanes, 1, 1)
    p["s1"], p["b1"] = _bn_fold(width, _padded_n(width))
    p["w2"] = _grouped_conv_wc(init, width, groups)
    p["s2"], p["b2"] = _bn_fold(width, width)
    p["w3"] = _conv_matB(init, out_c, width, 1, 1)
    p["s3"], p["b3"] = _bn_fold(out_c, _padded_n(out_c))
    if a["has_ds"]:
        p["wd"] = _conv_matB(init, out_c, inplanes, 1, 1)
        p["sd"], p["bd"] = _bn_fold(out_c, _padded_n(out_c))
    return p, a


def _make_resnet(init, num_image_layers, layers, groups, width_per_group, fc_out):
    params = {"blocks": []}
    arch = {"blocks": []}
    params["conv1_w"] = _conv_matB(init, 64, num_image_layers, 7, 7)
    params["bn1_s"], params["bn1_b"] = _bn_fold(64, _padded_n(64))
    inplanes = 64
    for stage, (planes, n_blocks) in enumerate(zip((64, 128, 256, 512), layers)):
        stage_stride = 1 if stage == 0 else 2
        bp, ba = [], []
        for bi in range(n_blocks):
            stride = stage_stride if bi == 0 else 1
            p, a = _make_bottleneck(init, inplanes, planes, stride,
                                    groups, width_per_group)
            bp.append(p)
            ba.append(a)
            inplanes = planes * EXPANSION
        params["blocks"].append(bp)
        arch["blocks"].append(ba)
    # self.cnn.fc replaced by nn.Linear(512 * expansion, config['fc_out']).
    params["fc_w"] = init.normal((512 * EXPANSION, fc_out),
                                 1.0 / math.sqrt(512 * EXPANSION))
    params["fc_b"] = jnp.zeros((fc_out,), jnp.float32)
    return params, arch


def make_radio_single_source_params(num_image_layers, len_aux_data, config, seed=0):
    init = _ParamInit(seed)
    cnn_p, cnn_a = _make_resnet(init, num_image_layers, (3, 4, 23, 3),
                                groups=32, width_per_group=8,
                                fc_out=config["fc_out"])
    head = {
        "source1_w": init.normal((len_aux_data, config["fc_final"]),
                                 1.0 / math.sqrt(len_aux_data)),
        "source1_b": jnp.zeros((config["fc_final"],), jnp.float32),
        "source2_w": init.normal((config["fc_final"], config["fc_out"]),
                                 1.0 / math.sqrt(config["fc_final"])),
        "source2_b": jnp.zeros((config["fc_out"],), jnp.float32),
        "fc1_w": init.normal((2 * config["fc_out"], config["fc_final"]),
                             1.0 / math.sqrt(2 * config["fc_out"])),
        "fc1_b": jnp.zeros((config["fc_final"],), jnp.float32),
        "fc2_w": init.normal((config["fc_final"], 2),
                             1.0 / math.sqrt(config["fc_final"])),
        "fc2_b": jnp.zeros((2,), jnp.float32),
    }
    return {"cnn": cnn_p, "head": head}, {"cnn": cnn_a}


# ----------------------------------------------------------------------------
# Forward pass
# ----------------------------------------------------------------------------
def _bottleneck_forward(x, p, a):
    out = conv1x1_bn_act(x, p["w1"], p["s1"], p["b1"], None, stride=1, act="relu")
    if a["stride"] == 1:
        out = conv3x3_grouped_s1(out, p["w2"], p["s2"], p["b2"], act="relu")
    else:
        out = conv3x3_grouped_s2(out, p["w2"], p["s2"], p["b2"], act="relu")
    if a["has_ds"]:
        identity = conv1x1_bn_act(x, p["wd"], p["sd"], p["bd"], None,
                                  stride=a["stride"], act="none")
    else:
        identity = x
    # conv3 + BN + residual add + ReLU fused into one matmul epilogue.
    return conv1x1_bn_act(out, p["w3"], p["s3"], p["b3"], identity,
                          stride=1, act="relu")


def _resnet_forward(x_nhwc, params, arch):
    x = conv_kxk_bn_act(x_nhwc, params["conv1_w"], params["bn1_s"], params["bn1_b"],
                        kh=7, kw=7, stride=2, pad=3, act="relu", cout=64)
    x = maxpool_3x3_s2_p1(x)
    for bp_stage, ba_stage in zip(params["blocks"], arch["blocks"]):
        for p, a in zip(bp_stage, ba_stage):
            x = _bottleneck_forward(x, p, a)
    return _global_pool_fc(x, params["fc_w"], params["fc_b"])


def radio_single_source_forward(params, arch, config, image, data):
    act = config["act"] if config["act"] in ("leaky", "elu") else "relu"
    x = jnp.transpose(image, (0, 2, 3, 1)).astype(jnp.bfloat16)   # NCHW -> NHWC
    x1 = _resnet_forward(x, params["cnn"], arch["cnn"])
    return _head_forward(x1, data, params["head"], act=act)


if __name__ == "__main__":
    num_image_layers = 4
    len_aux_data = 8
    config = {"fc_out": 32, "fc_final": 16, "act": "relu"}

    key = jax.random.PRNGKey(0)
    k_img, k_aux = jax.random.split(key)
    image = jax.random.normal(k_img, (2, num_image_layers, 16, 16), jnp.float32)
    data = jax.random.normal(k_aux, (2, len_aux_data), jnp.float32)

    params, arch = make_radio_single_source_params(num_image_layers, len_aux_data,
                                                   config, seed=0)
    out = radio_single_source_forward(params, arch, config, image, data)
    out = jax.block_until_ready(out)
    assert out.shape == (2, 2), out.shape
    assert bool(jnp.all(jnp.isfinite(out)))
    print("KERNEL_OK")
</pallas_src>

<mosaic_0001>
module attributes {stable_mosaic.version = 11 : i64} {
  func.func @_mm_kernel(%arg0: i32, %arg1: i32, %arg2: i32, %arg3: memref<128x256xbf16, #tpu.memory_space<vmem>>, %arg4: memref<256x128xbf16, #tpu.memory_space<vmem>>, %arg5: memref<1x128xf32, #tpu.memory_space<vmem>>, %arg6: memref<1x128xf32, #tpu.memory_space<vmem>>, %arg7: memref<128x128xbf16, #tpu.memory_space<vmem>>, %arg8: memref<128x128xf32, #tpu.memory_space<vmem>>) attributes {dimension_semantics = [#tpu.dimension_semantics<parallel>, #tpu.dimension_semantics<parallel>, #tpu.dimension_semantics<arbitrary>], iteration_bounds = array<i64: 1, 1, 1>, scalar_prefetch = 0 : i64, scratch_operands = 1 : i64, tpu.core_type = #tpu.core_type<tc>, window_params = [{transform_indices = @transform_0, window_bounds = array<i64: 128, 256>}, {transform_indices = @transform_1, window_bounds = array<i64: 256, 128>}, {transform_indices = @transform_2, window_bounds = array<i64: 1, 128>}, {transform_indices = @transform_3, window_bounds = array<i64: 1, 128>}, {transform_indices = @transform_4, window_bounds = array<i64: 128, 128>}]} {
    %c0_i32 = arith.constant 0 : i32
    %0 = arith.cmpi eq, %arg2, %c0_i32 : i32
    %1 = arith.extui %0 : i1 to i32
    %c0_i32_0 = arith.constant 0 : i32
    %2 = arith.cmpi ne, %1, %c0_i32_0 : i32
    scf.if %2 {
      %cst_10 = arith.constant 0.000000e+00 : f32
      %12 = vector.broadcast %cst_10 : f32 to vector<128x128xf32>
      %c0_11 = arith.constant 0 : index
      %c0_12 = arith.constant 0 : index
      %13 = vector.load %arg8[%c0_11, %c0_12] : memref<128x128xf32, #tpu.memory_space<vmem>>, vector<128x128xf32>
      tpu.vector_store %arg8[%c0_11, %c0_12], %12 {strides = array<i32>} : memref<128x128xf32, #tpu.memory_space<vmem>>, vector<128x128xf32>,
    } else {
    }
    %c0 = arith.constant 0 : index
    %c0_1 = arith.constant 0 : index
    %3 = vector.load %arg8[%c0, %c0_1] : memref<128x128xf32, #tpu.memory_space<vmem>>, vector<128x128xf32>
    %c0_2 = arith.constant 0 : index
    %c0_3 = arith.constant 0 : index
    %4 = vector.load %arg3[%c0_2, %c0_3] : memref<128x256xbf16, #tpu.memory_space<vmem>>, vector<128x256xbf16>
    %c0_4 = arith.constant 0 : index
    %c0_5 = arith.constant 0 : index
    %5 = vector.load %arg4[%c0_4, %c0_5] : memref<256x128xbf16, #tpu.memory_space<vmem>>, vector<256x128xbf16>
    %cst = arith.constant dense<0.000000e+00> : vector<128x128xf32>
    %6 = tpu.matmul %4, %5, %cst {dimension_numbers = #tpu.dot_dimension_numbers<[1], [0], [0], [1], [0, 0, 1, 1], [], []>} : vector<128x256xbf16>, vector<256x128xbf16>, vector<128x128xf32> -> vector<128x128xf32>
    %7 = arith.addf %3, %6 : vector<128x128xf32>
    %c0_6 = arith.constant 0 : index
    %c0_7 = arith.constant 0 : index
    %8 = vector.load %arg8[%c0_6, %c0_7] : memref<128x128xf32, #tpu.memory_space<vmem>>, vector<128x128xf32>
    tpu.vector_store %arg8[%c0_6, %c0_7], %7 {strides = array<i32>} : memref<128x128xf32, #tpu.memory_space<vmem>>, vector<128x128xf32>,
    %c0_i32_8 = arith.constant 0 : i32
    %9 = arith.cmpi eq, %arg2, %c0_i32_8 : i32
    %10 = arith.extui %9 : i1 to i32
    %c0_i32_9 = arith.constant 0 : i32
    %11 = arith.cmpi ne, %10, %c0_i32_9 : i32
    scf.if %11 {
      %c0_10 = arith.constant 0 : index
      %c0_11 = arith.constant 0 : index
      %12 = vector.load %arg8[%c0_10, %c0_11] : memref<128x128xf32, #tpu.memory_space<vmem>>, vector<128x128xf32>
      %c0_12 = arith.constant 0 : index
      %c0_13 = arith.constant 0 : index
      %13 = vector.load %arg5[%c0_12, %c0_13] : memref<1x128xf32, #tpu.memory_space<vmem>>, vector<1x128xf32>
      %14 = vector.broadcast %13 : vector<1x128xf32> to vector<128x128xf32>
      %15 = arith.mulf %12, %14 : vector<128x128xf32>
      %c0_14 = arith.constant 0 : index
      %c0_15 = arith.constant 0 : index
      %16 = vector.load %arg6[%c0_14, %c0_15] : memref<1x128xf32, #tpu.memory_space<vmem>>, vector<1x128xf32>
      %17 = vector.broadcast %16 : vector<1x128xf32> to vector<128x128xf32>
      %18 = arith.addf %15, %17 : vector<128x128xf32>
      %cst_16 = arith.constant 0.000000e+00 : f32
      %19 = vector.broadcast %cst_16 : f32 to vector<128x128xf32>
      %20 = arith.maximumf %18, %19 : vector<128x128xf32>
      %21 = arith.truncf %20 : vector<128x128xf32> to vector<128x128xbf16>
      %c0_17 = arith.constant 0 : index
      %c0_18 = arith.constant 0 : index
      %22 = vector.load %arg7[%c0_17, %c0_18] : memref<128x128xbf16, #tpu.memory_space<vmem>>, vector<128x128xbf16>
      tpu.vector_store %arg7[%c0_17, %c0_18], %21 {strides = array<i32>} : memref<128x128xbf16, #tpu.memory_space<vmem>>, vector<128x128xbf16>,
    } else {
    }
    return
  }
  func.func @transform_0(%arg0: i32, %arg1: i32, %arg2: i32) -> (i32, i32) {
    %c0_i32 = arith.constant 0 : i32
    return %arg0, %arg2 : i32, i32
  }
  func.func @transform_1(%arg0: i32, %arg1: i32, %arg2: i32) -> (i32, i32) {
    %c0_i32 = arith.constant 0 : i32
    return %arg2, %arg1 : i32, i32
  }
  func.func @transform_2(%arg0: i32, %arg1: i32, %arg2: i32) -> (i32, i32) {
    %c0_i32 = arith.constant 0 : i32
    %c0_i32_0 = arith.constant 0 : i32
    return %c0_i32, %arg1 : i32, i32
  }
  func.func @transform_3(%arg0: i32, %arg1: i32, %arg2: i32) -> (i32, i32) {
    %c0_i32 = arith.constant 0 : i32
    %c0_i32_0 = arith.constant 0 : i32
    return %c0_i32, %arg1 : i32, i32
  }
  func.func @transform_4(%arg0: i32, %arg1: i32, %arg2: i32) -> (i32, i32) {
    %c0_i32 = arith.constant 0 : i32
    return %arg0, %arg1 : i32, i32
  }
}

</mosaic_0001>

<bundles_post_ra>
// kernel: conv_kxk_bn_act.1
= control target key start
LH: loop header
LB: loop body
LE: loop exit
PB: predicated region body
PF: predicated region fallthrough
CT: control target
= control target key end

     0   :  { %s1004_s0 = inlined_call_operand.vmem [shape: bf16[128,256], index: 0, kind: input, shape index: {}]   ;;  %s1005_s1 = inlined_call_operand.vmem [shape: bf16[256,128], index: 1, kind: input, shape index: {}]   ;;  %s1006_s2 = inlined_call_operand.vmem [shape: f32[1,128], index: 2, kind: input, shape index: {}]   ;;  %s1007_s3 = inlined_call_operand.vmem [shape: f32[1,128], index: 3, kind: input, shape index: {}]   ;;  %s1008_s4 = inlined_call_operand.hbm [shape: bf16[128,128], index: 4, kind: output, shape index: {}]  }
   0x1   :  { %v684_v0 = vld [vmem:[%s1005_s1 + $0x38] sm:$0xff]  ;;  %v683_v2 = vld [vmem:[%s1005_s1 + $0x30] sm:$0xff]  ;;  %v682_v4 = vld [vmem:[%s1005_s1 + $0x28] sm:$0xff] }
   0x2   :  { %v692_v1 = vld [vmem:[%s1005_s1 + $0x78] sm:$0xff]  ;;  %278 = vmatpush.bf16.msra.mxu0 %v684_v0  ;;  %740 = vmatpush.bf16.msra.mxu2 %v684_v0  ;;  %v691_v3 = vld [vmem:[%s1005_s1 + $0x70] sm:$0xff]  ;;  %v690_v5 = vld [vmem:[%s1005_s1 + $0x68] sm:$0xff] }
   0x3   :  { %327 = vmatpush.bf16.msra.mxu1 %v692_v1  ;;  %748 = vmatpush.bf16.msra.mxu3 %v692_v1 }
   0x6   :  { %279 = vmatpush.bf16.msra.mxu0 %v683_v2  ;;  %741 = vmatpush.bf16.msra.mxu2 %v683_v2 }
   0x7   :  { %328 = vmatpush.bf16.msra.mxu1 %v691_v3  ;;  %749 = vmatpush.bf16.msra.mxu3 %v691_v3 }
   0x8   :  { %9 = vsyncpa [#allocation4], 0  ;;  %v681_v6 = vld [vmem:[%s1005_s1 + $0x20] sm:$0xff]  ;;  %v680_v8 = vld [vmem:[%s1005_s1 + $0x18] sm:$0xff]  ;;  %s521_s9 = sshll.u32 %s1008_s4, 4  ;;  %s788_s10 = smov 64   ;;  %s522_s9 = int_to_ptr.hbm [resolvable:$true] %s521_s9 }
   0x9   :  { %v689_v7 = vld [vmem:[%s1005_s1 + $0x60] sm:$0xff]  ;;  %v688_v9 = vld [vmem:[%s1005_s1 + $0x58] sm:$0xff]  ;;  %v679_v10 = vld [vmem:[%s1005_s1 + $0x10] sm:$0xff]  ;;  %s789_s11 = smov 4  }
   0xa   :  { %280 = vmatpush.bf16.msra.mxu0 %v682_v4  ;;  %742 = vmatpush.bf16.msra.mxu2 %v682_v4  ;;  %v687_v11 = vld [vmem:[%s1005_s1 + $0x50] sm:$0xff]  ;;  %v678_v12 = vld [vmem:[%s1005_s1 + $0x8] sm:$0xff]  ;;  %v677_v14 = vld [vmem:[%s1005_s1] sm:$0xff] }
   0xb   :  { %329 = vmatpush.bf16.msra.mxu1 %v690_v5  ;;  %750 = vmatpush.bf16.msra.mxu3 %v690_v5  ;;  %v686_v13 = vld [vmem:[%s1005_s1 + $0x48] sm:$0xff]  ;;  %v685_v15 = vld [vmem:[%s1005_s1 + $0x40] sm:$0xff]  ;;  %v543_v28 = vld [vmem:[%s1004_s0 + $0x10] sm:$0xf] }
   0xc   :  { %v535_v16 = vld [vmem:[%s1004_s0] sm:$0xf]  ;;  %v662_v17 = vld [vmem:[%s1004_s0 + $0x4] sm:$0xf0]  ;;  %v661_v20 = vld [vmem:[%s1004_s0 + $0x4] sm:$0xf] }
   0xd   :  { %v567_v18 = vld [vmem:[%s1004_s0 + $0x40] sm:$0xf]  ;;  %v670_v19 = vld [vmem:[%s1004_s0 + $0x44] sm:$0xf0]  ;;  %v537_v21 = vld [vmem:[%s1004_s0 + $0x8] sm:$0xf0]  ;;  %v536_v24 = vor.u32 %v662_v17, %v535_v16 }
   0xe   :  { %281 = vmatpush.bf16.msra.mxu0 %v681_v6  ;;  %743 = vmatpush.bf16.msra.mxu2 %v681_v6  ;;  %v669_v22 = vld [vmem:[%s1004_s0 + $0x44] sm:$0xf]  ;;  %v569_v23 = vld [vmem:[%s1004_s0 + $0x48] sm:$0xf0]  ;;  %v568_v25 = vor.u32 %v670_v19, %v567_v18  ;;  %v540_v26 = vor.u32 %v661_v20, %v537_v21  ;;  %v664_v29 = vld [vmem:[%s1004_s0 + $0x14] sm:$0xf0] }
   0xf   :  { %330 = vmatpush.bf16.msra.mxu1 %v689_v7  ;;  %751 = vmatpush.bf16.msra.mxu3 %v689_v7  ;;  %v572_v27 = vor.u32 %v669_v22, %v569_v23  ;;  %v575_v30 = vld [vmem:[%s1004_s0 + $0x50] sm:$0xf]  ;;  %v672_v31 = vld [vmem:[%s1004_s0 + $0x54] sm:$0xf0]  ;;  %v663_v32 = vld [vmem:[%s1004_s0 + $0x14] sm:$0xf]  ;;  %v544_v36 = vor.u32 %v664_v29, %v543_v28 }
  0x10   :  { %v545_v33 = vld [vmem:[%s1004_s0 + $0x18] sm:$0xf0]  ;;  %v671_v34 = vld [vmem:[%s1004_s0 + $0x54] sm:$0xf]  ;;  %v576_v37 = vor.u32 %v672_v31, %v575_v30  ;;  %v551_v40 = vld [vmem:[%s1004_s0 + $0x20] sm:$0xf] }
  0x11   :  { %v577_v35 = vld [vmem:[%s1004_s0 + $0x58] sm:$0xf0]  ;;  %v548_v38 = vor.u32 %v663_v32, %v545_v33  ;;  %v666_v41 = vld [vmem:[%s1004_s0 + $0x24] sm:$0xf0]  ;;  %v583_v42 = vld [vmem:[%s1004_s0 + $0x60] sm:$0xf] }
  0x12   :  { %282 = vmatpush.bf16.msra.mxu0 %v680_v8  ;;  %744 = vmatpush.bf16.msra.mxu2 %v680_v8  ;;  %v580_v39 = vor.u32 %v671_v34, %v577_v35  ;;  %v674_v43 = vld [vmem:[%s1004_s0 + $0x64] sm:$0xf0]  ;;  %v665_v44 = vld [vmem:[%s1004_s0 + $0x24] sm:$0xf]  ;;  %v553_v45 = vld [vmem:[%s1004_s0 + $0x28] sm:$0xf0]  ;;  %v552_v48 = vor.u32 %v666_v41, %v551_v40 }
  0x13   :  { %331 = vmatpush.bf16.msra.mxu1 %v688_v9  ;;  %752 = vmatpush.bf16.msra.mxu3 %v688_v9  ;;  %v673_v46 = vld [vmem:[%s1004_s0 + $0x64] sm:$0xf]  ;;  %v585_v47 = vld [vmem:[%s1004_s0 + $0x68] sm:$0xf0]  ;;  %v584_v49 = vor.u32 %v674_v43, %v583_v42  ;;  %v556_v50 = vor.u32 %v665_v44, %v553_v45  ;;  %v559_v52 = vld [vmem:[%s1004_s0 + $0x30] sm:$0xf] }
  0x14   :  { %v588_v51 = vor.u32 %v673_v46, %v585_v47  ;;  %v668_v53 = vld [vmem:[%s1004_s0 + $0x34] sm:$0xf0]  ;;  %v591_v54 = vld [vmem:[%s1004_s0 + $0x70] sm:$0xf]  ;;  %v667_v56 = vld [vmem:[%s1004_s0 + $0x34] sm:$0xf] }
  0x15   :  { %v676_v55 = vld [vmem:[%s1004_s0 + $0x74] sm:$0xf0]  ;;  %v561_v57 = vld [vmem:[%s1004_s0 + $0x38] sm:$0xf0]  ;;  %v675_v58 = vld [vmem:[%s1004_s0 + $0x74] sm:$0xf]  ;;  %v560_v60 = vor.u32 %v668_v53, %v559_v52 }
  0x16   :  { %283 = vmatpush.bf16.msra.mxu0 %v679_v10  ;;  %745 = vmatpush.bf16.msra.mxu2 %v679_v10  ;;  %v593_v59 = vld [vmem:[%s1004_s0 + $0x78] sm:$0xf0]  ;;  %v592_v61 = vor.u32 %v676_v55, %v591_v54  ;;  %v564_v62 = vor.u32 %v667_v56, %v561_v57  ;;  %v962_v3 = vld [vmem:[%s1006_s2] ss:$0 sm:$0xff]  ;;  %s787_s2 = smov [#allocation3]  }
  0x17   :  { %332 = vmatpush.bf16.msra.mxu1 %v687_v11  ;;  %753 = vmatpush.bf16.msra.mxu3 %v687_v11  ;;  %v596_v63 = vor.u32 %v675_v58, %v593_v59  ;;  %v968_v7 = vld [vmem:[%s1007_s3] ss:$0 sm:$0xff]  ;;  %s519_s3 = sshll.u32 %s787_s2, 4  ;;  %s520_s3 = int_to_ptr.vmem [resolvable:$true] %s519_s3 }
  0x1a   :  { %284 = vmatpush.bf16.msra.mxu0 %v678_v12  ;;  %746 = vmatpush.bf16.msra.mxu2 %v678_v12 }
  0x1b   :  { %333 = vmatpush.bf16.msra.mxu1 %v686_v13  ;;  %754 = vmatpush.bf16.msra.mxu3 %v686_v13 }
  0x1e   :  { %285 = vmatpush.bf16.msra.mxu0 %v677_v14  ;;  %747 = vmatpush.bf16.msra.mxu2 %v677_v14 }
  0x1f   :  { %334 = vmatpush.bf16.msra.mxu1 %v685_v15  ;;  %755 = vmatpush.bf16.msra.mxu3 %v685_v15 }
  0x21   :  { %286 = vmatmul.bf16.vlgmr.msra.gmra.mxu0 %v536_v24  ;;  %306 = vmatmul.bf16.vlgmr.msra.gmra.mxu2 %v568_v25 }
  0x22   :  { %335 = vmatmul.bf16.vlgmr.msra.gmra.mxu1 %v540_v26  ;;  %355 = vmatmul.bf16.vlgmr.msra.gmra.mxu3 %v572_v27 }
  0x31   :  { %291 = vmatmul.bf16.gmra.mxu0 %v544_v36  ;;  %311 = vmatmul.bf16.gmra.mxu2 %v576_v37 }
  0x32   :  { %340 = vmatmul.bf16.gmra.mxu1 %v548_v38  ;;  %360 = vmatmul.bf16.gmra.mxu3 %v580_v39 }
  0x41   :  { %296 = vmatmul.bf16.gmra.mxu0 %v552_v48  ;;  %316 = vmatmul.bf16.gmra.mxu2 %v584_v49 }
  0x42   :  { %345 = vmatmul.bf16.gmra.mxu1 %v556_v50  ;;  %365 = vmatmul.bf16.gmra.mxu3 %v588_v51 }
  0x51   :  { %301 = vmatmul.bf16.gmra.mxu0 %v560_v60  ;;  %321 = vmatmul.bf16.gmra.mxu2 %v592_v61 }
  0x52   :  { %350 = vmatmul.bf16.gmra.mxu1 %v564_v62  ;;  %370 = vmatmul.bf16.gmra.mxu3 %v596_v63 }
  0x9e   :  { %v287_v0 = vpop.f32.mrf.mxu0 }
  0x9f   :  { %v336_v1 = vpop.f32.mrf.mxu1 }
  0xa0   :  { %v337_v2 = vadd.f32 %v336_v1, %v287_v0 }
  0xa2   :  { %v431_v6 = vmul.f32 %v962_v3, %v337_v2 }
  0xa4   :  { %v307_v4 = vpop.f32.mrf.mxu2  ;;  %v451_v12 = vadd.f32 %v968_v7, %v431_v6 }
  0xa5   :  { %v356_v5 = vpop.f32.mrf.mxu3 }
  0xa6   :  { %v289_v8 = vpop.f32.mrf.mxu0  ;;  %v357_v10 = vadd.f32 %v356_v5, %v307_v4  ;;  %v467_v18 = vmax.f32 %v451_v12, 0.0 }
  0xa7   :  { %v338_v9 = vpop.f32.mrf.mxu1 }
  0xa8   :  { %v339_v11 = vadd.f32 %v338_v9, %v289_v8  ;;  %v439_v14 = vmul.f32 %v962_v3, %v357_v10 }
  0xaa   :  { %v432_v13 = vmul.f32 %v962_v3, %v339_v11  ;;  %v459_v23 = vadd.f32 %v968_v7, %v439_v14 }
  0xac   :  { %v452_v15 = vadd.f32 %v968_v7, %v432_v13  ;;  %v309_v16 = vpop.f32.mrf.mxu2  ;;  %v475_v28 = vmax.f32 %v459_v23, 0.0 }
  0xad   :  { %v358_v17 = vpop.f32.mrf.mxu3 }
  0xae   :  { %v468_v19 = vmax.f32 %v452_v15, 0.0  ;;  %v359_v20 = vadd.f32 %v358_v17, %v309_v16  ;;  %v292_v21 = vpop.f32.mrf.mxu0 }
  0xaf   :  { %v341_v22 = vpop.f32.mrf.mxu1 }
  0xb0   :  { %v696_v24 = vpack.c.bf16 %v468_v19, %v467_v18  ;;  %v440_v25 = vmul.f32 %v962_v3, %v359_v20  ;;  %v342_v27 = vadd.f32 %v341_v22, %v292_v21 }
  0xb2   :  { %697 = vst [vmem:[#allocation3] sm:$0xff] %v696_v24   ;;  %v460_v26 = vadd.f32 %v968_v7, %v440_v25  ;;  %v433_v33 = vmul.f32 %v962_v3, %v342_v27 }
  0xb4   :  { %v476_v29 = vmax.f32 %v460_v26, 0.0  ;;  %v312_v30 = vpop.f32.mrf.mxu2  ;;  %v453_v38 = vadd.f32 %v968_v7, %v433_v33 }
  0xb5   :  { %v361_v31 = vpop.f32.mrf.mxu3 }
  0xb6   :  { %v716_v32 = vpack.c.bf16 %v476_v29, %v475_v28  ;;  %v294_v34 = vpop.f32.mrf.mxu0  ;;  %v362_v36 = vadd.f32 %v361_v31, %v312_v30  ;;  %v469_v44 = vmax.f32 %v453_v38, 0.0 }
  0xb7   :  { %v343_v35 = vpop.f32.mrf.mxu1 }
  0xb8   :  { %736 = vst [vmem:[#allocation3 + $0x20] sm:$0xff] %v716_v32   ;;  %v344_v37 = vadd.f32 %v343_v35, %v294_v34  ;;  %v441_v40 = vmul.f32 %v962_v3, %v362_v36 }
  0xba   :  { %v434_v39 = vmul.f32 %v962_v3, %v344_v37  ;;  %v461_v49 = vadd.f32 %v968_v7, %v441_v40 }
  0xbc   :  { %v454_v41 = vadd.f32 %v968_v7, %v434_v39  ;;  %v314_v42 = vpop.f32.mrf.mxu2  ;;  %v477_v54 = vmax.f32 %v461_v49, 0.0 }
  0xbd   :  { %v363_v43 = vpop.f32.mrf.mxu3 }
  0xbe   :  { %v470_v45 = vmax.f32 %v454_v41, 0.0  ;;  %v364_v46 = vadd.f32 %v363_v43, %v314_v42  ;;  %v297_v47 = vpop.f32.mrf.mxu0 }
  0xbf   :  { %v346_v48 = vpop.f32.mrf.mxu1 }
  0xc0   :  { %v701_v50 = vpack.c.bf16 %v470_v45, %v469_v44  ;;  %v442_v51 = vmul.f32 %v962_v3, %v364_v46  ;;  %v347_v53 = vadd.f32 %v346_v48, %v297_v47 }
  0xc2   :  { %733 = vst [vmem:[#allocation3 + $0x8] sm:$0xff] %v701_v50   ;;  %v462_v52 = vadd.f32 %v968_v7, %v442_v51  ;;  %v435_v59 = vmul.f32 %v962_v3, %v347_v53 }
  0xc4   :  { %v478_v55 = vmax.f32 %v462_v52, 0.0  ;;  %v317_v56 = vpop.f32.mrf.mxu2  ;;  %v455_v0 = vadd.f32 %v968_v7, %v435_v59 }
  0xc5   :  { %v366_v57 = vpop.f32.mrf.mxu3 }
  0xc6   :  { %v721_v58 = vpack.c.bf16 %v478_v55, %v477_v54  ;;  %v299_v60 = vpop.f32.mrf.mxu0  ;;  %v367_v62 = vadd.f32 %v366_v57, %v317_v56  ;;  %v471_v8 = vmax.f32 %v455_v0, 0.0 }
  0xc7   :  { %v348_v61 = vpop.f32.mrf.mxu1 }
  0xc8   :  { %737 = vst [vmem:[#allocation3 + $0x28] sm:$0xff] %v721_v58   ;;  %v349_v63 = vadd.f32 %v348_v61, %v299_v60  ;;  %v443_v2 = vmul.f32 %v962_v3, %v367_v62 }
  0xca   :  { %v436_v1 = vmul.f32 %v962_v3, %v349_v63  ;;  %v463_v13 = vadd.f32 %v968_v7, %v443_v2 }
  0xcc   :  { %v456_v4 = vadd.f32 %v968_v7, %v436_v1  ;;  %v319_v5 = vpop.f32.mrf.mxu2  ;;  %v479_v18 = vmax.f32 %v463_v13, 0.0 }
  0xcd   :  { %v368_v6 = vpop.f32.mrf.mxu3 }
  0xce   :  { %v472_v9 = vmax.f32 %v456_v4, 0.0  ;;  %v369_v10 = vadd.f32 %v368_v6, %v319_v5  ;;  %v302_v11 = vpop.f32.mrf.mxu0 }
  0xcf   :  { %v351_v12 = vpop.f32.mrf.mxu1 }
  0xd0   :  { %v706_v14 = vpack.c.bf16 %v472_v9, %v471_v8  ;;  %v444_v15 = vmul.f32 %v962_v3, %v369_v10  ;;  %v352_v17 = vadd.f32 %v351_v12, %v302_v11 }
  0xd2   :  { %734 = vst [vmem:[#allocation3 + $0x10] sm:$0xff] %v706_v14   ;;  %v464_v16 = vadd.f32 %v968_v7, %v444_v15  ;;  %v437_v23 = vmul.f32 %v962_v3, %v352_v17 }
  0xd4   :  { %v480_v19 = vmax.f32 %v464_v16, 0.0  ;;  %v322_v20 = vpop.f32.mrf.mxu2  ;;  %v457_v28 = vadd.f32 %v968_v7, %v437_v23 }
  0xd5   :  { %v371_v21 = vpop.f32.mrf.mxu3 }
  0xd6   :  { %v726_v22 = vpack.c.bf16 %v480_v19, %v479_v18  ;;  %v304_v24 = vpop.f32.mrf.mxu0  ;;  %v372_v26 = vadd.f32 %v371_v21, %v322_v20  ;;  %v473_v34 = vmax.f32 %v457_v28, 0.0 }
  0xd7   :  { %v353_v25 = vpop.f32.mrf.mxu1 }
  0xd8   :  { %738 = vst [vmem:[#allocation3 + $0x30] sm:$0xff] %v726_v22   ;;  %v354_v27 = vadd.f32 %v353_v25, %v304_v24  ;;  %v445_v30 = vmul.f32 %v962_v3, %v372_v26 }
  0xda   :  { %v438_v29 = vmul.f32 %v962_v3, %v354_v27  ;;  %v465_v37 = vadd.f32 %v968_v7, %v445_v30 }
  0xdc   :  { %v458_v31 = vadd.f32 %v968_v7, %v438_v29  ;;  %v324_v32 = vpop.f32.mrf.mxu2  ;;  %v481_v41 = vmax.f32 %v465_v37, 0.0 }
  0xdd   :  { %v373_v33 = vpop.f32.mrf.mxu3 }
  0xde   :  { %v474_v35 = vmax.f32 %v458_v31, 0.0  ;;  %v374_v36 = vadd.f32 %v373_v33, %v324_v32 }
  0xe0   :  { %v711_v38 = vpack.c.bf16 %v474_v35, %v473_v34  ;;  %v446_v39 = vmul.f32 %v962_v3, %v374_v36 }
  0xe2   :  { %735 = vst [vmem:[#allocation3 + $0x18] sm:$0xff] %v711_v38   ;;  %v466_v40 = vadd.f32 %v968_v7, %v446_v39 }
  0xe4   :  { %v482_v42 = vmax.f32 %v466_v40, 0.0 }
  0xe6   :  { %v731_v43 = vpack.c.bf16 %v482_v42, %v481_v41 }
  0xe8   :  { %739 = vst [vmem:[#allocation3 + $0x38] sm:$0xff] %v731_v43  }
  0xe9   :  { %527 = dma.vmem_to_hbm [thread:$0]  %s520_s3, 1024, %s522_s9, [#allocation4], %s788_s10, %s788_s10, %s789_s11  }
  0xea   :  { %785 = dma.done.wait [#allocation4], 1024  }
  0xeb   :  { %786 = vsyncadd [#allocation4], 4294966272 }
  0xec   :  { %532 = vsyncpa [#allocation4], 1 }

</bundles_post_ra>
